<compile_context>
chip_gen: v5e
topology: v5e:2x2
jax: 0.10.0
libtpu: 0.0.40
codegen_flags: <defaults>
</compile_context>

<pallas_src>
import math
from functools import partial

import jax
import jax.numpy as jnp
from jax.experimental import pallas as pl
from jax.experimental.pallas import tpu as pltpu


# --------------------------------------------------------------------------
# Kernel
# --------------------------------------------------------------------------
def _make_ffn_kernel(num_layers):
    """Kernel computing the whole MLP for one row-tile of (packed) x."""

    def kernel(x_ref, *refs):
        o_ref = refs[-1]
        wb_refs = refs[:-1]                 # (w0, b0, w1, b1, ...), VMEM-resident
        compute_dtype = x_ref.dtype
        h = x_ref[...]
        for l in range(num_layers):
            w = wb_refs[2 * l][...]
            b = wb_refs[2 * l + 1][...]     # (1, width) -> broadcasts over rows
            h = jnp.dot(h, w, preferred_element_type=jnp.float32)
            h = h + b.astype(jnp.float32)
            if l < num_layers - 1:
                h = jnp.maximum(h, 0.0)     # ReLU; dropout(p=0.0) == identity
                # Keep the MXU on the native (e.g. bf16) fast path for the
                # next layer instead of carrying an f32 LHS into jnp.dot.
                h = h.astype(compute_dtype)
        o_ref[...] = h.astype(o_ref.dtype)

    return kernel


# --------------------------------------------------------------------------
# Host-side helpers
# --------------------------------------------------------------------------
def _round_up(x, m):
    return ((x + m - 1) // m) * m


def _num_tensorcores():
    """Best-effort count of TensorCores sharing the 'parallel' grid axis."""
    try:
        kind = jax.devices()[0].device_kind.lower()
    except Exception:
        return 1
    # v7x has 2 TCs per chip; v4/v5p megacore also shards parallel axes.
    if any(tag in kind for tag in ("v7", "v4", "v5p")):
        return 2
    return 1


def _choose_row_tile(n_packed, sublane, num_tc):
    """Pick (tm, grid_steps) for the packed-row axis."""
    tm_max = 1024 if num_tc >= 2 else 512   # bigger tiles pay off on v7x HBM
    if num_tc >= 2:
        # Even, near-equal step count so both TensorCores stay busy.
        steps = num_tc * max(1, pl.cdiv(n_packed, num_tc * tm_max))
        tm = pl.cdiv(n_packed, steps)
    else:
        # Single TC: the grid is a serial loop; never force a split.
        tm = min(tm_max, n_packed)
    if tm < n_packed:
        tm = _round_up(max(tm, sublane), sublane)
    grid_steps = pl.cdiv(n_packed, tm)
    return tm, grid_steps


def _block_diag(w, p):
    """(k, n) -> (p*k, p*n) block-diagonal repetition of w (p copies)."""
    if p == 1:
        return w
    k, n = w.shape
    eye = jnp.eye(p, dtype=w.dtype)
    return (eye[:, None, :, None] * w[None, :, None, :]).reshape(p * k, p * n)


def init_feedforward_params(key, d_in, d_out, widths=(32,), dtype=jnp.float32):
    """Deterministic init matching the PyTorch module's layer shapes
    (uniform +-1/sqrt(fan_in), like torch.nn.Linear's default)."""
    dims = [d_in] + list(widths) + [d_out]
    params = []
    for i in range(len(dims) - 1):
        fan_in, fan_out = dims[i], dims[i + 1]
        key, kw, kb = jax.random.split(key, 3)
        bound = 1.0 / (fan_in ** 0.5)
        # Stored as (fan_in, fan_out) so the kernel does x @ W (no transpose).
        w = jax.random.uniform(kw, (fan_in, fan_out), dtype, -bound, bound)
        b = jax.random.uniform(kb, (1, fan_out), dtype, -bound, bound)
        params.append((w, b))
    return params


def prepare_feedforward(params, *, num_tc=None, packed_weight_budget_bytes=None):
    """One-time packing of the layer params (hoisted out of the jitted path).

    Packs P consecutive rows of x into the 128-lane dimension and builds
    block-diagonal weights so every load / matmul / store is lane-dense.
    """
    d_in = params[0][0].shape[0]
    d_out = params[-1][0].shape[1]
    if num_tc is None:
        num_tc = _num_tensorcores()

    # Lane-dense packing factor from BOTH feature dims (both are powers of
    # two over gcd(128, .), so lcm == max).
    P = max(128 // math.gcd(128, d_in), 128 // math.gcd(128, d_out))

    # Opt out only if the packed (P^2-inflated), double-buffered weights
    # exceed a chip-aware VMEM byte budget.
    raw_w_bytes = sum(int(w.size) * w.dtype.itemsize for w, _ in params)
    if packed_weight_budget_bytes is None:
        packed_weight_budget_bytes = (2 if num_tc >= 2 else 4) * 1024 * 1024
    if P > 1 and 2 * P * P * raw_w_bytes > packed_weight_budget_bytes:
        P = 1

    flat_params = []                        # (w0, b0, w1, b1, ...), packed
    for w, b in params:
        flat_params.append(_block_diag(w, P))
        flat_params.append(jnp.tile(b, (1, P)) if P > 1 else b)

    return {
        "flat_params": tuple(jax.device_put(a) for a in flat_params),
        "P": P,
        "d_in": d_in,
        "d_out": d_out,
        "num_layers": len(params),
        "num_tc": num_tc,
    }


# --------------------------------------------------------------------------
# Pallas-backed forward
# --------------------------------------------------------------------------
@partial(jax.jit, static_argnums=(2, 3, 4, 5, 6))
def _feedforward_call(x, flat_params, P, d_in, d_out, num_layers, num_tc):
    orig_shape = x.shape
    x2 = x.reshape(-1, d_in)
    n_rows = x2.shape[0]

    # Pack P consecutive rows into the lane dimension (dense 128-lane tiles).
    n_pad = (-n_rows) % P                   # at most P-1 rows, usually 0
    if n_pad:
        x2 = jnp.pad(x2, ((0, n_pad), (0, 0)))
    n_packed = x2.shape[0] // P
    xp = x2.reshape(n_packed, P * d_in)

    # Dtype-aware sublane rounding: 8 rows/f32, 16/bf16, 32/int8.
    itemsize = jnp.dtype(x.dtype).itemsize
    sublane = 8 * max(1, 4 // itemsize)
    tm, grid_steps = _choose_row_tile(n_packed, sublane, num_tc)

    in_specs = [pl.BlockSpec((tm, P * d_in), lambda i: (i, 0))]
    for arr in flat_params:                 # grid-invariant, fully VMEM-resident
        in_specs.append(pl.BlockSpec(arr.shape, lambda i: (0, 0)))

    out = pl.pallas_call(
        _make_ffn_kernel(num_layers),
        out_shape=jax.ShapeDtypeStruct((n_packed, P * d_out), x.dtype),
        grid=(grid_steps,),
        in_specs=in_specs,
        out_specs=pl.BlockSpec((tm, P * d_out), lambda i: (i, 0)),
        compiler_params=pltpu.CompilerParams(
            dimension_semantics=("parallel",)),
    )(xp, *flat_params)

    # Keep this slice: padded / boundary rows are computed on garbage and
    # must be discarded (rows are independent, so this is safe).
    out = out.reshape(n_packed * P, d_out)[:n_rows]
    return out.reshape(*orig_shape[:-1], d_out)


def feedforward_pallas(x, prepared):
    """Applies the MLP to the last axis of x with one fused Pallas kernel."""
    return _feedforward_call(
        x,
        prepared["flat_params"],
        prepared["P"],
        prepared["d_in"],
        prepared["d_out"],
        prepared["num_layers"],
        prepared["num_tc"],
    )


def feedforward_ref(x, params):
    """Pure-JAX reference mirroring the PyTorch forward."""
    h = x
    for w, b in params[:-1]:
        h = jnp.maximum(h @ w + b[0], 0.0)  # dropout(p=0) is identity
    w, b = params[-1]
    return h @ w + b[0]


if __name__ == "__main__":
    key = jax.random.PRNGKey(0)
    k_x, k_p = jax.random.split(key)

    # Small shapes consistent with the module: batch=2, seq=64, d_in=16,
    # widths=[32] (default), d_out=16.  128 rows -> 16 packed rows, which
    # runs as 1 tile on v5e/v6e and 2 balanced tiles on v7x.
    B, S, d_in, d_out = 2, 64, 16, 16
    widths = [32]

    x = jax.random.normal(k_x, (B, S, d_in), dtype=jnp.float32)
    params = init_feedforward_params(k_p, d_in, d_out, widths)

    prepared = prepare_feedforward(params)   # one-time weight packing
    out = feedforward_pallas(x, prepared)
    out = jax.block_until_ready(out)

    ref = feedforward_ref(x, params)
    assert out.shape == (B, S, d_out), out.shape
    assert jnp.allclose(out, ref, atol=1e-4, rtol=1e-4), (
        float(jnp.max(jnp.abs(out - ref))))

    print("KERNEL_OK")
</pallas_src>

<mosaic_0001>
module attributes {stable_mosaic.version = 11 : i64} {
  func.func @kernel(%arg0: i32, %arg1: memref<16x128xf32, #tpu.memory_space<vmem>>, %arg2: memref<128x256xf32, #tpu.memory_space<vmem>>, %arg3: memref<1x256xf32, #tpu.memory_space<vmem>>, %arg4: memref<256x128xf32, #tpu.memory_space<vmem>>, %arg5: memref<1x128xf32, #tpu.memory_space<vmem>>, %arg6: memref<16x128xf32, #tpu.memory_space<vmem>>) attributes {dimension_semantics = [#tpu.dimension_semantics<parallel>], iteration_bounds = array<i64: 1>, scalar_prefetch = 0 : i64, scratch_operands = 0 : i64, tpu.core_type = #tpu.core_type<tc>, window_params = [{transform_indices = @transform_0, window_bounds = array<i64: 16, 128>}, {pipeline_mode = #tpu.pipeline_mode<synchronous>, transform_indices = @transform_1, window_bounds = array<i64: 128, 256>}, {pipeline_mode = #tpu.pipeline_mode<synchronous>, transform_indices = @transform_2, window_bounds = array<i64: 1, 256>}, {pipeline_mode = #tpu.pipeline_mode<synchronous>, transform_indices = @transform_3, window_bounds = array<i64: 256, 128>}, {pipeline_mode = #tpu.pipeline_mode<synchronous>, transform_indices = @transform_4, window_bounds = array<i64: 1, 128>}, {transform_indices = @transform_5, window_bounds = array<i64: 16, 128>}]} {
    %c0 = arith.constant 0 : index
    %c0_0 = arith.constant 0 : index
    %0 = vector.load %arg1[%c0, %c0_0] : memref<16x128xf32, #tpu.memory_space<vmem>>, vector<16x128xf32>
    %c0_1 = arith.constant 0 : index
    %c0_2 = arith.constant 0 : index
    %1 = vector.load %arg2[%c0_1, %c0_2] : memref<128x256xf32, #tpu.memory_space<vmem>>, vector<128x256xf32>
    %c0_3 = arith.constant 0 : index
    %c0_4 = arith.constant 0 : index
    %2 = vector.load %arg3[%c0_3, %c0_4] : memref<1x256xf32, #tpu.memory_space<vmem>>, vector<1x256xf32>
    %cst = arith.constant dense<0.000000e+00> : vector<16x256xf32>
    %3 = tpu.matmul %0, %1, %cst {dimension_numbers = #tpu.dot_dimension_numbers<[1], [0], [0], [1], [0, 0, 1, 1], [], []>} : vector<16x128xf32>, vector<128x256xf32>, vector<16x256xf32> -> vector<16x256xf32>
    %4 = vector.broadcast %2 : vector<1x256xf32> to vector<16x256xf32>
    %5 = arith.addf %3, %4 : vector<16x256xf32>
    %cst_5 = arith.constant 0.000000e+00 : f32
    %6 = vector.broadcast %cst_5 : f32 to vector<16x256xf32>
    %7 = arith.maximumf %5, %6 : vector<16x256xf32>
    %c0_6 = arith.constant 0 : index
    %c0_7 = arith.constant 0 : index
    %8 = vector.load %arg4[%c0_6, %c0_7] : memref<256x128xf32, #tpu.memory_space<vmem>>, vector<256x128xf32>
    %c0_8 = arith.constant 0 : index
    %c0_9 = arith.constant 0 : index
    %9 = vector.load %arg5[%c0_8, %c0_9] : memref<1x128xf32, #tpu.memory_space<vmem>>, vector<1x128xf32>
    %cst_10 = arith.constant dense<0.000000e+00> : vector<16x128xf32>
    %10 = tpu.matmul %7, %8, %cst_10 {dimension_numbers = #tpu.dot_dimension_numbers<[1], [0], [0], [1], [0, 0, 1, 1], [], []>} : vector<16x256xf32>, vector<256x128xf32>, vector<16x128xf32> -> vector<16x128xf32>
    %11 = vector.broadcast %9 : vector<1x128xf32> to vector<16x128xf32>
    %12 = arith.addf %10, %11 : vector<16x128xf32>
    %c0_11 = arith.constant 0 : index
    %c0_12 = arith.constant 0 : index
    %13 = vector.load %arg6[%c0_11, %c0_12] : memref<16x128xf32, #tpu.memory_space<vmem>>, vector<16x128xf32>
    tpu.vector_store %arg6[%c0_11, %c0_12], %12 {strides = array<i32>} : memref<16x128xf32, #tpu.memory_space<vmem>>, vector<16x128xf32>,
    return
  }
  func.func @transform_0(%arg0: i32) -> (i32, i32) {
    %c0_i32 = arith.constant 0 : i32
    %c0_i32_0 = arith.constant 0 : i32
    return %arg0, %c0_i32 : i32, i32
  }
  func.func @transform_1(%arg0: i32) -> (i32, i32) {
    %c0_i32 = arith.constant 0 : i32
    %c0_i32_0 = arith.constant 0 : i32
    %c0_i32_1 = arith.constant 0 : i32
    return %c0_i32, %c0_i32_0 : i32, i32
  }
  func.func @transform_2(%arg0: i32) -> (i32, i32) {
    %c0_i32 = arith.constant 0 : i32
    %c0_i32_0 = arith.constant 0 : i32
    %c0_i32_1 = arith.constant 0 : i32
    return %c0_i32, %c0_i32_0 : i32, i32
  }
  func.func @transform_3(%arg0: i32) -> (i32, i32) {
    %c0_i32 = arith.constant 0 : i32
    %c0_i32_0 = arith.constant 0 : i32
    %c0_i32_1 = arith.constant 0 : i32
    return %c0_i32, %c0_i32_0 : i32, i32
  }
  func.func @transform_4(%arg0: i32) -> (i32, i32) {
    %c0_i32 = arith.constant 0 : i32
    %c0_i32_0 = arith.constant 0 : i32
    %c0_i32_1 = arith.constant 0 : i32
    return %c0_i32, %c0_i32_0 : i32, i32
  }
  func.func @transform_5(%arg0: i32) -> (i32, i32) {
    %c0_i32 = arith.constant 0 : i32
    %c0_i32_0 = arith.constant 0 : i32
    return %arg0, %c0_i32 : i32, i32
  }
}

</mosaic_0001>

<bundles_post_ra>
// kernel: _feedforward_call.1
= control target key start
LH: loop header
LB: loop body
LE: loop exit
PB: predicated region body
PF: predicated region fallthrough
CT: control target
= control target key end

     0   :  { %10 = vsyncpa [#allocation3], 0  ;;  %s245_s21 = smov [#allocation2]   ;;  %s246_s23 = smov 128   ;;  %s395_s0 = inlined_call_operand.vmem [shape: f32[16,128], index: 0, kind: input, shape index: {}]   ;;  %s396_s1 = inlined_call_operand.vmem [shape: f32[128,256], index: 1, kind: input, shape index: {}]   ;;  %s397_s2 = inlined_call_operand.vmem [shape: f32[1,256], index: 2, kind: input, shape index: {}]   ;;  %s398_s3 = inlined_call_operand.hbm [shape: f32[256,128], index: 3, kind: input, shape index: {}]   ;;  %s399_s4 = inlined_call_operand.vmem [shape: f32[1,128], index: 4, kind: input, shape index: {}]   ;;  %s400_s5 = inlined_call_operand.vmem [shape: f32[16,128], index: 5, kind: output, shape index: {}]  }
   0x1   :  { %s21_s20 = sshll.u32 %s398_s3, 4  ;;  %s23_s22 = sshll.u32 %s245_s21, 4  ;;  %s22_s20 = int_to_ptr.hbm [resolvable:$true] %s21_s20  ;;  %s24_s22 = int_to_ptr.vmem [resolvable:$true] %s23_s22 }
   0x2   :  { %s247_s24 = smov 8  }
   0x3   :  { %29 = dma.hbm_to_vmem [thread:$0]  %s22_s20, 4096, %s24_s22, [#allocation3], %s246_s23, %s246_s23, %s247_s24  }
   0x4   :  { %243 = dma.done.wait [#allocation3], 4096  }
   0x5   :  { %244 = vsyncadd [#allocation3], 4294963200  ;;  %v68_v0 = vld [vmem:[%s396_s1 + $0xf0] sm:$0xff]  ;;  %v66_v1 = vld [vmem:[%s396_s1 + $0xe0] sm:$0xff] }
   0x6   :  { %v69_v2 = vld [vmem:[%s396_s1 + $0xf8] sm:$0xff]  ;;  %76 = vmatpush.msra.mxu0 %v68_v0  ;;  %v67_v3 = vld [vmem:[%s396_s1 + $0xe8] sm:$0xff]  ;;  %v64_v4 = vld [vmem:[%s396_s1 + $0xd0] sm:$0xff] }
   0x7   :  { %99 = vmatpush.msra.mxu1 %v69_v2  ;;  %v65_v5 = vld [vmem:[%s396_s1 + $0xd8] sm:$0xff]  ;;  %v62_v6 = vld [vmem:[%s396_s1 + $0xc0] sm:$0xff]  ;;  %v63_v7 = vld [vmem:[%s396_s1 + $0xc8] sm:$0xff] }
   0x8   :  { %77 = vmatpush.msra.mxu0 %v66_v1  ;;  %v60_v8 = vld [vmem:[%s396_s1 + $0xb0] sm:$0xff]  ;;  %v61_v9 = vld [vmem:[%s396_s1 + $0xb8] sm:$0xff]  ;;  %v58_v10 = vld [vmem:[%s396_s1 + $0xa0] sm:$0xff] }
   0x9   :  { %100 = vmatpush.msra.mxu1 %v67_v3  ;;  %v59_v11 = vld [vmem:[%s396_s1 + $0xa8] sm:$0xff]  ;;  %v56_v12 = vld [vmem:[%s396_s1 + $0x90] sm:$0xff]  ;;  %v57_v13 = vld [vmem:[%s396_s1 + $0x98] sm:$0xff] }
   0xa   :  { %78 = vmatpush.msra.mxu0 %v64_v4  ;;  %v141_v14 = vld [vmem:[#allocation2 + $0x78] sm:$0xff]  ;;  %v140_v15 = vld [vmem:[#allocation2 + $0x70] sm:$0xff]  ;;  %v54_v16 = vld [vmem:[%s396_s1 + $0x80] sm:$0xff] }
   0xb   :  { %101 = vmatpush.msra.mxu1 %v65_v5  ;;  %v55_v17 = vld [vmem:[%s396_s1 + $0x88] sm:$0xff]  ;;  %162 = vmatpush.msra.mxu2 %v141_v14  ;;  %v157_v18 = vld [vmem:[#allocation2 + $0xf8] sm:$0xff]  ;;  %v156_v20 = vld [vmem:[#allocation2 + $0xf0] sm:$0xff] }
   0xc   :  { %79 = vmatpush.msra.mxu0 %v62_v6  ;;  %v139_v19 = vld [vmem:[#allocation2 + $0x68] sm:$0xff]  ;;  %v52_v21 = vld [vmem:[%s396_s1 + $0x70] sm:$0xff]  ;;  %v53_v22 = vld [vmem:[%s396_s1 + $0x78] sm:$0xff]  ;;  %185 = vmatpush.msra.mxu3 %v157_v18 }
   0xd   :  { %102 = vmatpush.msra.mxu1 %v63_v7  ;;  %163 = vmatpush.msra.mxu2 %v140_v15  ;;  %v138_v23 = vld [vmem:[#allocation2 + $0x60] sm:$0xff]  ;;  %v155_v24 = vld [vmem:[#allocation2 + $0xe8] sm:$0xff]  ;;  %v137_v27 = vld [vmem:[#allocation2 + $0x58] sm:$0xff] }
   0xe   :  { %80 = vmatpush.msra.mxu0 %v60_v8  ;;  %v50_v25 = vld [vmem:[%s396_s1 + $0x60] sm:$0xff]  ;;  %v51_v26 = vld [vmem:[%s396_s1 + $0x68] sm:$0xff]  ;;  %186 = vmatpush.msra.mxu3 %v156_v20  ;;  %v48_v29 = vld [vmem:[%s396_s1 + $0x50] sm:$0xff] }
   0xf   :  { %103 = vmatpush.msra.mxu1 %v61_v9  ;;  %164 = vmatpush.msra.mxu2 %v139_v19  ;;  %v154_v28 = vld [vmem:[#allocation2 + $0xe0] sm:$0xff]  ;;  %v49_v30 = vld [vmem:[%s396_s1 + $0x58] sm:$0xff]  ;;  %v136_v31 = vld [vmem:[#allocation2 + $0x50] sm:$0xff] }
  0x10   :  { %81 = vmatpush.msra.mxu0 %v58_v10  ;;  %187 = vmatpush.msra.mxu3 %v155_v24  ;;  %v153_v32 = vld [vmem:[#allocation2 + $0xd8] sm:$0xff]  ;;  %v46_v33 = vld [vmem:[%s396_s1 + $0x40] sm:$0xff]  ;;  %v47_v34 = vld [vmem:[%s396_s1 + $0x48] sm:$0xff] }
  0x11   :  { %104 = vmatpush.msra.mxu1 %v59_v11  ;;  %165 = vmatpush.msra.mxu2 %v138_v23  ;;  %v135_v35 = vld [vmem:[#allocation2 + $0x48] sm:$0xff]  ;;  %v152_v36 = vld [vmem:[#allocation2 + $0xd0] sm:$0xff]  ;;  %v45_v38 = vld [vmem:[%s396_s1 + $0x38] sm:$0xff] }
  0x12   :  { %82 = vmatpush.msra.mxu0 %v56_v12  ;;  %188 = vmatpush.msra.mxu3 %v154_v28  ;;  %v44_v37 = vld [vmem:[%s396_s1 + $0x30] sm:$0xff]  ;;  %v134_v39 = vld [vmem:[#allocation2 + $0x40] sm:$0xff]  ;;  %v151_v40 = vld [vmem:[#allocation2 + $0xc8] sm:$0xff] }
  0x13   :  { %105 = vmatpush.msra.mxu1 %v57_v13  ;;  %166 = vmatpush.msra.mxu2 %v137_v27  ;;  %v42_v41 = vld [vmem:[%s396_s1 + $0x20] sm:$0xff]  ;;  %v43_v42 = vld [vmem:[%s396_s1 + $0x28] sm:$0xff]  ;;  %v133_v43 = vld [vmem:[#allocation2 + $0x38] sm:$0xff] }
  0x14   :  { %83 = vmatpush.msra.mxu0 %v54_v16  ;;  %189 = vmatpush.msra.mxu3 %v153_v32  ;;  %v150_v44 = vld [vmem:[#allocation2 + $0xc0] sm:$0xff]  ;;  %v40_v45 = vld [vmem:[%s396_s1 + $0x10] sm:$0xff]  ;;  %v41_v46 = vld [vmem:[%s396_s1 + $0x18] sm:$0xff] }
  0x15   :  { %106 = vmatpush.msra.mxu1 %v55_v17  ;;  %167 = vmatpush.msra.mxu2 %v136_v31  ;;  %v132_v47 = vld [vmem:[#allocation2 + $0x30] sm:$0xff]  ;;  %v149_v48 = vld [vmem:[#allocation2 + $0xb8] sm:$0xff]  ;;  %v38_v49 = vld [vmem:[%s396_s1] sm:$0xff] }
  0x16   :  { %84 = vmatpush.msra.mxu0 %v52_v21  ;;  %190 = vmatpush.msra.mxu3 %v152_v36  ;;  %v39_v50 = vld [vmem:[%s396_s1 + $0x8] sm:$0xff]  ;;  %v36_v51 = vld [vmem:[%s395_s0] sm:$0xff]  ;;  %v148_v53 = vld [vmem:[#allocation2 + $0xb0] sm:$0xff] }
  0x17   :  { %107 = vmatpush.msra.mxu1 %v53_v22  ;;  %168 = vmatpush.msra.mxu2 %v135_v35  ;;  %v131_v52 = vld [vmem:[#allocation2 + $0x28] sm:$0xff]  ;;  %v130_v54 = vld [vmem:[#allocation2 + $0x20] sm:$0xff]  ;;  %v129_v56 = vld [vmem:[#allocation2 + $0x18] sm:$0xff] }
  0x18   :  { %85 = vmatpush.msra.mxu0 %v50_v25  ;;  %191 = vmatpush.msra.mxu3 %v151_v40  ;;  %v147_v55 = vld [vmem:[#allocation2 + $0xa8] sm:$0xff]  ;;  %v146_v57 = vld [vmem:[#allocation2 + $0xa0] sm:$0xff]  ;;  %v128_v59 = vld [vmem:[#allocation2 + $0x10] sm:$0xff] }
  0x19   :  { %108 = vmatpush.msra.mxu1 %v51_v26  ;;  %169 = vmatpush.msra.mxu2 %v134_v39  ;;  %v37_v58 = vld [vmem:[%s395_s0 + $0x8] sm:$0xff]  ;;  %v145_v60 = vld [vmem:[#allocation2 + $0x98] sm:$0xff]  ;;  %v144_v62 = vld [vmem:[#allocation2 + $0x90] sm:$0xff] }
  0x1a   :  { %86 = vmatpush.msra.mxu0 %v48_v29  ;;  %192 = vmatpush.msra.mxu3 %v150_v44  ;;  %v127_v61 = vld [vmem:[#allocation2 + $0x8] sm:$0xff]  ;;  %v126_v63 = vld [vmem:[#allocation2] sm:$0xff] }
  0x1b   :  { %109 = vmatpush.msra.mxu1 %v49_v30  ;;  %170 = vmatpush.msra.mxu2 %v133_v43  ;;  %v143_v0 = vld [vmem:[#allocation2 + $0x88] sm:$0xff]  ;;  %v142_v1 = vld [vmem:[#allocation2 + $0x80] sm:$0xff] }
  0x1c   :  { %87 = vmatpush.msra.mxu0 %v46_v33  ;;  %193 = vmatpush.msra.mxu3 %v149_v48  ;;  %v70_v2 = vld [vmem:[%s397_s2] sm:$0x3] }
  0x1d   :  { %110 = vmatpush.msra.mxu1 %v47_v34  ;;  %171 = vmatpush.msra.mxu2 %v132_v47  ;;  %v72_v3 = vperm.slane %v70_v2, 0  ;;  %v73_v4 = vperm.slane %v70_v2, 1  ;;  %v218_v17 = vld [vmem:[%s399_s4] ss:$0 sm:$0xff] }
  0x1e   :  { %88 = vmatpush.msra.mxu0 %v44_v37  ;;  %194 = vmatpush.msra.mxu3 %v148_v53 }
  0x1f   :  { %111 = vmatpush.msra.mxu1 %v45_v38  ;;  %172 = vmatpush.msra.mxu2 %v131_v52 }
  0x20   :  { %89 = vmatpush.msra.mxu0 %v42_v41  ;;  %195 = vmatpush.msra.mxu3 %v147_v55 }
  0x21   :  { %112 = vmatpush.msra.mxu1 %v43_v42  ;;  %173 = vmatpush.msra.mxu2 %v130_v54 }
  0x22   :  { %90 = vmatpush.msra.mxu0 %v40_v45  ;;  %196 = vmatpush.msra.mxu3 %v146_v57 }
  0x23   :  { %113 = vmatpush.msra.mxu1 %v41_v46  ;;  %174 = vmatpush.msra.mxu2 %v129_v56 }
  0x24   :  { %91 = vmatpush.msra.mxu0 %v38_v49  ;;  %197 = vmatpush.msra.mxu3 %v145_v60 }
  0x25   :  { %114 = vmatpush.msra.mxu1 %v39_v50  ;;  %92 = vmatmul.f32.vlgmr.msra.gmra.mxu0 %v36_v51 }
  0x26   :  { %115 = vmatmul.f32.vlgmr.msra.gmra.mxu1 %v36_v51  ;;  %175 = vmatpush.msra.mxu2 %v128_v59 }
  0x27   :  { %198 = vmatpush.msra.mxu3 %v144_v62 }
  0x28   :  { %176 = vmatpush.msra.mxu2 %v127_v61 }
  0x29   :  { %199 = vmatpush.msra.mxu3 %v143_v0 }
  0x2a   :  { %177 = vmatpush.msra.mxu2 %v126_v63 }
  0x2b   :  { %200 = vmatpush.msra.mxu3 %v142_v1 }
  0x2d   :  { %95 = vmatmul.f32.gmra.mxu0 %v37_v58 }
  0x2e   :  { %118 = vmatmul.f32.gmra.mxu1 %v37_v58 }
  0xa2   :  { %v93_v5 = vpop.f32.mrf.mxu0 }
  0xa3   :  { %v116_v6 = vpop.f32.mrf.mxu1  ;;  %v94_v7 = vadd.f32 %v93_v5, %v72_v3 }
  0xa4   :  { %v117_v8 = vadd.f32 %v116_v6, %v73_v4 }
  0xa5   :  { %v122_v9 = vmax.f32 %v94_v7, 0.0 }
  0xa6   :  { %v123_v10 = vmax.f32 %v117_v8, 0.0 }
  0xa7   :  { %178 = vmatmul.f32.vlgmr.msra.gmra.mxu2 %v122_v9 }
  0xa8   :  { %201 = vmatmul.f32.vlgmr.msra.gmra.mxu3 %v123_v10 }
  0xaa   :  { %v96_v11 = vpop.f32.mrf.mxu0 }
  0xab   :  { %v119_v12 = vpop.f32.mrf.mxu1  ;;  %v97_v13 = vadd.f32 %v96_v11, %v72_v3 }
  0xac   :  { %v120_v14 = vadd.f32 %v119_v12, %v73_v4 }
  0xad   :  { %v124_v15 = vmax.f32 %v97_v13, 0.0 }
  0xae   :  { %v125_v16 = vmax.f32 %v120_v14, 0.0 }
  0xaf   :  { %181 = vmatmul.f32.gmra.mxu2 %v124_v15 }
  0xb0   :  { %204 = vmatmul.f32.gmra.mxu3 %v125_v16 }
 0x12a   :  { %v179_v18 = vpop.f32.mrf.mxu2 }
 0x12b   :  { %v202_v19 = vpop.f32.mrf.mxu3  ;;  %v180_v20 = vadd.f32 %v218_v17, %v179_v18 }
 0x12d   :  { %v203_v21 = vadd.f32 %v202_v19, %v180_v20 }
 0x12f   :  { %208 = vst [vmem:[%s400_s5] sm:$0xff] %v203_v21 }
 0x132   :  { %v182_v22 = vpop.f32.mrf.mxu2 }
 0x133   :  { %v205_v23 = vpop.f32.mrf.mxu3  ;;  %v183_v24 = vadd.f32 %v218_v17, %v182_v22 }
 0x135   :  { %v206_v25 = vadd.f32 %v205_v23, %v183_v24 }
 0x137   :  { %209 = vst [vmem:[%s400_s5 + $0x8] sm:$0xff] %v206_v25 }
 0x138   :  { %214 = vsyncpa [#allocation3], 1 }

</bundles_post_ra>
